<compile_context>
chip_gen: v7x
topology: tpu7x:2x2x1
jax: 0.10.0
libtpu: 0.0.40
codegen_flags: <defaults>
</compile_context>

<pallas_src>
import functools

import jax
import jax.numpy as jnp
from jax.experimental import pallas as pl
from jax.experimental.pallas import tpu as pltpu


def _private_spatial_kernel(
    emb_ref,     # [TB, E, D]  bf16
    inv_ref,     # [TB, 2]     f32 : (1/clamp(sum(active_mask),1), 1/clamp(sum(reserve_mask),1))
    wp_ref,      # [2D, D]     bf16 fused project weight (concat halves stacked on rows)
    bp_ref,      # [1, D]      f32
    w1a_ref, b1a_ref, w1b_ref, b1b_ref,    # residual block 1
    w2a_ref, b2a_ref, w2b_ref, b2b_ref,    # residual block 2
    wo_ref, bo_ref,                         # spatial_out
    o_ref,       # [TB, D]     f32
    *,
    n_active: int,
):
    f32 = jnp.float32
    bf16 = jnp.bfloat16

    emb = emb_ref[...]          # bf16 [TB, E, D]
    inv = inv_ref[...]          # f32  [TB, 2]

    # Entity-mean pooling; sums accumulate in f32.  The masked-count
    # normalization arrives pre-reciprocated -> one VPU multiply per pool.
    # NOTE: as in the PyTorch module, the numerator is NOT masked — masked
    # entity embeddings are assumed to be zeroed upstream.
    # TODO(synk): if E grows well beyond 8, restructure so E is a leading axis
    # (plain VPU vreg adds) instead of a sublane reduce through the XLU.
    active = jnp.sum(emb[:, :n_active, :].astype(f32), axis=1)    # [TB, D]
    reserve = jnp.sum(emb[:, n_active:, :].astype(f32), axis=1)   # [TB, D]
    active = active * inv[:, 0:1]
    reserve = reserve * inv[:, 1:2]

    # project(concat([active, reserve], -1)): one fused MXU pass.
    xcat = jnp.concatenate([active, reserve], axis=-1).astype(bf16)   # [TB, 2D]
    x = jnp.dot(xcat, wp_ref[...], preferred_element_type=f32) + bp_ref[...]

    # ResidualLayer 1: relu(x + L2(relu(L1(x))))
    h = jnp.maximum(
        jnp.dot(x.astype(bf16), w1a_ref[...], preferred_element_type=f32) + b1a_ref[...],
        0.0)
    h = jnp.dot(h.astype(bf16), w1b_ref[...], preferred_element_type=f32) + b1b_ref[...]
    x = jnp.maximum(x + h, 0.0)

    # ResidualLayer 2
    h = jnp.maximum(
        jnp.dot(x.astype(bf16), w2a_ref[...], preferred_element_type=f32) + b2a_ref[...],
        0.0)
    h = jnp.dot(h.astype(bf16), w2b_ref[...], preferred_element_type=f32) + b2b_ref[...]
    x = jnp.maximum(x + h, 0.0)

    # spatial_out
    o_ref[...] = (
        jnp.dot(x.astype(bf16), wo_ref[...], preferred_element_type=f32) + bo_ref[...]
    ).astype(o_ref.dtype)


def private_spatial_encoder(entity_embeddings, mask, params, *, n_active: int,
                            max_batch_tile: int = 1024):
    """entity_embeddings: [B, E, D], mask: [B, E, 1] -> [B, 1, D] (f32)."""
    B, E, D = entity_embeddings.shape

    # ---- wrapper-side prep (cheap XLA ops on tiny tensors) ------------------
    emb = entity_embeddings.astype(jnp.bfloat16)          # halve HBM traffic

    # Reciprocal mask counts: replaces the [B,E,1] mask operand and the
    # in-kernel max/divide with a [B,2] f32 tensor and a multiply.
    msk = mask.reshape(B, E).astype(jnp.float32)
    inv_act = 1.0 / jnp.maximum(jnp.sum(msk[:, :n_active], axis=1, keepdims=True), 1.0)
    inv_res = 1.0 / jnp.maximum(jnp.sum(msk[:, n_active:], axis=1, keepdims=True), 1.0)
    inv = jnp.concatenate([inv_act, inv_res], axis=-1)    # [B, 2] f32

    weights = {
        k: (v.astype(jnp.bfloat16) if k.startswith("w") else v.astype(jnp.float32))
        for k, v in params.items()
    }
    w_ops = (
        weights["wp"], weights["bp"],
        weights["w1a"], weights["b1a"], weights["w1b"], weights["b1b"],
        weights["w2a"], weights["b2a"], weights["w2b"], weights["b2b"],
        weights["wo"], weights["bo"],
    )

    # ---- grid / tiling ------------------------------------------------------
    if B <= max_batch_tile:
        tb = B                                # single tile, no ragged edge
    else:
        tb = max(8, (max_batch_tile // 8) * 8)  # sublane dim multiple of 8
    grid = (pl.cdiv(B, tb),)

    emb_spec = pl.BlockSpec((tb, E, D), lambda i: (i, 0, 0))
    inv_spec = pl.BlockSpec((tb, 2), lambda i: (i, 0))
    out_spec = pl.BlockSpec((tb, D), lambda i: (i, 0))
    # Constant index_map: weight/bias blocks are DMA'd once and stay resident.
    w_specs = [pl.BlockSpec(w.shape, lambda i: (0, 0)) for w in w_ops]

    operands = (emb, inv) + w_ops

    flops = 2 * B * D * D * 7   # project (2D->D) + 4 resblock linears + spatial_out
    bytes_accessed = sum(int(a.size) * a.dtype.itemsize for a in operands) + B * D * 4

    out = pl.pallas_call(
        functools.partial(_private_spatial_kernel, n_active=n_active),
        grid=grid,
        in_specs=[emb_spec, inv_spec] + w_specs,
        out_specs=out_spec,
        out_shape=jax.ShapeDtypeStruct((B, D), jnp.float32),
        compiler_params=pltpu.CompilerParams(
            dimension_semantics=("parallel",),       # shard batch tiles across TCs
            vmem_limit_bytes=32 * 1024 * 1024,       # explicit; leaves headroom on v7x
        ),
        cost_estimate=pl.CostEstimate(
            flops=flops, transcendentals=0, bytes_accessed=bytes_accessed),
    )(*operands)

    # PyTorch forward keeps the pooled entity dim (keepdim=True) -> [B, 1, D]
    return out.reshape(B, 1, D)


def _init_linear(key, fan_in, fan_out):
    # PyTorch default Linear init: U(-1/sqrt(fan_in), 1/sqrt(fan_in)); weight
    # is returned pre-transposed as [in, out].
    kw, kb = jax.random.split(key)
    bound = 1.0 / jnp.sqrt(fan_in)
    w = jax.random.uniform(kw, (fan_in, fan_out), jnp.float32, -bound, bound)
    b = jax.random.uniform(kb, (1, fan_out), jnp.float32, -bound, bound)
    return w, b


def make_params(key, D):
    keys = jax.random.split(key, 6)
    wp, bp = _init_linear(keys[0], 2 * D, D)     # project: Linear(2D, D), fused weight
    w1a, b1a = _init_linear(keys[1], D, D)
    w1b, b1b = _init_linear(keys[2], D, D)
    w2a, b2a = _init_linear(keys[3], D, D)
    w2b, b2b = _init_linear(keys[4], D, D)
    wo, bo = _init_linear(keys[5], D, D)
    return {"wp": wp, "bp": bp,
            "w1a": w1a, "b1a": b1a, "w1b": w1b, "b1b": b1b,
            "w2a": w2a, "b2a": b2a, "w2b": w2b, "b2b": b2b,
            "wo": wo, "bo": bo}


def reference_forward(entity_embeddings, mask, params, *, n_active: int):
    """Pure-JAX restatement of the PyTorch forward (verification only)."""
    active = jnp.sum(entity_embeddings[:, :n_active, :], axis=1, keepdims=True)
    active = active / jnp.maximum(
        jnp.sum(mask[:, :n_active, :], axis=1, keepdims=True), 1.0)
    reserve = jnp.sum(entity_embeddings[:, n_active:, :], axis=1, keepdims=True)
    reserve = reserve / jnp.maximum(
        jnp.sum(mask[:, n_active:, :], axis=1, keepdims=True), 1.0)
    x = jnp.concatenate([active, reserve], axis=-1) @ params["wp"] + params["bp"]
    for wa, ba, wb, bb in (
        (params["w1a"], params["b1a"], params["w1b"], params["b1b"]),
        (params["w2a"], params["b2a"], params["w2b"], params["b2b"]),
    ):
        h = jax.nn.relu(x @ wa + ba) @ wb + bb
        x = jax.nn.relu(x + h)
    return x @ params["wo"] + params["bo"]


if __name__ == "__main__":
    B, E, D = 2, 8, 32          # batch, total entities, entity_embedding_dim
    n_active = 2                # first n_active entities are "active"

    key = jax.random.PRNGKey(0)
    k_emb, k_msk, k_par = jax.random.split(key, 3)

    entity_embeddings = jax.random.normal(k_emb, (B, E, D), jnp.float32)
    mask = (jax.random.uniform(k_msk, (B, E, 1)) > 0.3).astype(jnp.float32)
    params = make_params(k_par, D)

    out = private_spatial_encoder(entity_embeddings, mask, params, n_active=n_active)
    out = jax.block_until_ready(out)
    assert out.shape == (B, 1, D)

    # Reference computed in f32 but with the same bf16-quantized weights and
    # embeddings the kernel consumes, so the comparison isolates the small
    # in-kernel bf16 activation rounding (tolerance loosened accordingly).
    q_params = {k: (v.astype(jnp.bfloat16).astype(jnp.float32) if k.startswith("w") else v)
                for k, v in params.items()}
    q_emb = entity_embeddings.astype(jnp.bfloat16).astype(jnp.float32)
    ref = reference_forward(q_emb, mask, q_params, n_active=n_active)

    err = jnp.max(jnp.abs(out - ref))
    assert jnp.allclose(out, ref, atol=2e-2, rtol=2e-2), f"mismatch vs reference (max abs err {err})"

    print("KERNEL_OK")
</pallas_src>

<mosaic_0001>
module attributes {stable_mosaic.version = 11 : i64} {
  func.func @_private_spatial_kernel(%arg0: i32, %arg1: memref<2x8x32xbf16, #tpu.memory_space<vmem>>, %arg2: memref<2x2xf32, #tpu.memory_space<vmem>>, %arg3: memref<64x32xbf16, #tpu.memory_space<vmem>>, %arg4: memref<1x32xf32, #tpu.memory_space<vmem>>, %arg5: memref<32x32xbf16, #tpu.memory_space<vmem>>, %arg6: memref<1x32xf32, #tpu.memory_space<vmem>>, %arg7: memref<32x32xbf16, #tpu.memory_space<vmem>>, %arg8: memref<1x32xf32, #tpu.memory_space<vmem>>, %arg9: memref<32x32xbf16, #tpu.memory_space<vmem>>, %arg10: memref<1x32xf32, #tpu.memory_space<vmem>>, %arg11: memref<32x32xbf16, #tpu.memory_space<vmem>>, %arg12: memref<1x32xf32, #tpu.memory_space<vmem>>, %arg13: memref<32x32xbf16, #tpu.memory_space<vmem>>, %arg14: memref<1x32xf32, #tpu.memory_space<vmem>>, %arg15: memref<2x32xf32, #tpu.memory_space<vmem>>) attributes {dimension_semantics = [#tpu.dimension_semantics<parallel>], iteration_bounds = array<i64: 1>, scalar_prefetch = 0 : i64, scratch_operands = 0 : i64, tpu.core_type = #tpu.core_type<tc>, window_params = [{transform_indices = @transform_0, window_bounds = array<i64: 2, 8, 32>}, {transform_indices = @transform_1, window_bounds = array<i64: 2, 2>}, {pipeline_mode = #tpu.pipeline_mode<synchronous>, transform_indices = @transform_2, window_bounds = array<i64: 64, 32>}, {pipeline_mode = #tpu.pipeline_mode<synchronous>, transform_indices = @transform_3, window_bounds = array<i64: 1, 32>}, {pipeline_mode = #tpu.pipeline_mode<synchronous>, transform_indices = @transform_4, window_bounds = array<i64: 32, 32>}, {pipeline_mode = #tpu.pipeline_mode<synchronous>, transform_indices = @transform_5, window_bounds = array<i64: 1, 32>}, {pipeline_mode = #tpu.pipeline_mode<synchronous>, transform_indices = @transform_6, window_bounds = array<i64: 32, 32>}, {pipeline_mode = #tpu.pipeline_mode<synchronous>, transform_indices = @transform_7, window_bounds = array<i64: 1, 32>}, {pipeline_mode = #tpu.pipeline_mode<synchronous>, transform_indices = @transform_8, window_bounds = array<i64: 32, 32>}, {pipeline_mode = #tpu.pipeline_mode<synchronous>, transform_indices = @transform_9, window_bounds = array<i64: 1, 32>}, {pipeline_mode = #tpu.pipeline_mode<synchronous>, transform_indices = @transform_10, window_bounds = array<i64: 32, 32>}, {pipeline_mode = #tpu.pipeline_mode<synchronous>, transform_indices = @transform_11, window_bounds = array<i64: 1, 32>}, {pipeline_mode = #tpu.pipeline_mode<synchronous>, transform_indices = @transform_12, window_bounds = array<i64: 32, 32>}, {pipeline_mode = #tpu.pipeline_mode<synchronous>, transform_indices = @transform_13, window_bounds = array<i64: 1, 32>}, {transform_indices = @transform_14, window_bounds = array<i64: 2, 32>}]} {
    %c0 = arith.constant 0 : index
    %c0_0 = arith.constant 0 : index
    %c0_1 = arith.constant 0 : index
    %0 = vector.load %arg1[%c0, %c0_0, %c0_1] : memref<2x8x32xbf16, #tpu.memory_space<vmem>>, vector<2x8x32xbf16>
    %c0_2 = arith.constant 0 : index
    %c0_3 = arith.constant 0 : index
    %1 = vector.load %arg2[%c0_2, %c0_3] : memref<2x2xf32, #tpu.memory_space<vmem>>, vector<2x2xf32>
    %2 = vector.extract_strided_slice %0 {offsets = [0, 0, 0], sizes = [2, 2, 32], strides = [1, 1, 1]} : vector<2x8x32xbf16> to vector<2x2x32xbf16>
    %3 = arith.extf %2 : vector<2x2x32xbf16> to vector<2x2x32xf32>
    %cst = arith.constant dense<0.000000e+00> : vector<2x32xf32>
    %4 = vector.multi_reduction <add>, %3, %cst [1] : vector<2x2x32xf32> to vector<2x32xf32>
    %5 = vector.extract_strided_slice %0 {offsets = [0, 2, 0], sizes = [2, 6, 32], strides = [1, 1, 1]} : vector<2x8x32xbf16> to vector<2x6x32xbf16>
    %6 = arith.extf %5 : vector<2x6x32xbf16> to vector<2x6x32xf32>
    %cst_4 = arith.constant dense<0.000000e+00> : vector<2x32xf32>
    %7 = vector.multi_reduction <add>, %6, %cst_4 [1] : vector<2x6x32xf32> to vector<2x32xf32>
    %8 = vector.extract_strided_slice %1 {offsets = [0, 0], sizes = [2, 1], strides = [1, 1]} : vector<2x2xf32> to vector<2x1xf32>
    %9 = vector.broadcast %8 : vector<2x1xf32> to vector<2x32xf32>
    %10 = arith.mulf %4, %9 : vector<2x32xf32>
    %11 = vector.extract_strided_slice %1 {offsets = [0, 1], sizes = [2, 1], strides = [1, 1]} : vector<2x2xf32> to vector<2x1xf32>
    %12 = vector.broadcast %11 : vector<2x1xf32> to vector<2x32xf32>
    %13 = arith.mulf %7, %12 : vector<2x32xf32>
    %14 = tpu.concatenate %10, %13 in 1 : vector<2x32xf32>, vector<2x32xf32> -> vector<2x64xf32>
    %15 = arith.truncf %14 : vector<2x64xf32> to vector<2x64xbf16>
    %c0_5 = arith.constant 0 : index
    %c0_6 = arith.constant 0 : index
    %16 = vector.load %arg3[%c0_5, %c0_6] : memref<64x32xbf16, #tpu.memory_space<vmem>>, vector<64x32xbf16>
    %cst_7 = arith.constant dense<0.000000e+00> : vector<2x32xf32>
    %17 = tpu.matmul %15, %16, %cst_7 {dimension_numbers = #tpu.dot_dimension_numbers<[1], [0], [0], [1], [0, 0, 1, 1], [], []>} : vector<2x64xbf16>, vector<64x32xbf16>, vector<2x32xf32> -> vector<2x32xf32>
    %c0_8 = arith.constant 0 : index
    %c0_9 = arith.constant 0 : index
    %18 = vector.load %arg4[%c0_8, %c0_9] : memref<1x32xf32, #tpu.memory_space<vmem>>, vector<1x32xf32>
    %19 = vector.broadcast %18 : vector<1x32xf32> to vector<2x32xf32>
    %20 = arith.addf %17, %19 : vector<2x32xf32>
    %21 = arith.truncf %20 : vector<2x32xf32> to vector<2x32xbf16>
    %c0_10 = arith.constant 0 : index
    %c0_11 = arith.constant 0 : index
    %22 = vector.load %arg5[%c0_10, %c0_11] : memref<32x32xbf16, #tpu.memory_space<vmem>>, vector<32x32xbf16>
    %cst_12 = arith.constant dense<0.000000e+00> : vector<2x32xf32>
    %23 = tpu.matmul %21, %22, %cst_12 {dimension_numbers = #tpu.dot_dimension_numbers<[1], [0], [0], [1], [0, 0, 1, 1], [], []>} : vector<2x32xbf16>, vector<32x32xbf16>, vector<2x32xf32> -> vector<2x32xf32>
    %c0_13 = arith.constant 0 : index
    %c0_14 = arith.constant 0 : index
    %24 = vector.load %arg6[%c0_13, %c0_14] : memref<1x32xf32, #tpu.memory_space<vmem>>, vector<1x32xf32>
    %25 = vector.broadcast %24 : vector<1x32xf32> to vector<2x32xf32>
    %26 = arith.addf %23, %25 : vector<2x32xf32>
    %cst_15 = arith.constant 0.000000e+00 : f32
    %27 = vector.broadcast %cst_15 : f32 to vector<2x32xf32>
    %28 = arith.maximumf %26, %27 : vector<2x32xf32>
    %29 = arith.truncf %28 : vector<2x32xf32> to vector<2x32xbf16>
    %c0_16 = arith.constant 0 : index
    %c0_17 = arith.constant 0 : index
    %30 = vector.load %arg7[%c0_16, %c0_17] : memref<32x32xbf16, #tpu.memory_space<vmem>>, vector<32x32xbf16>
    %cst_18 = arith.constant dense<0.000000e+00> : vector<2x32xf32>
    %31 = tpu.matmul %29, %30, %cst_18 {dimension_numbers = #tpu.dot_dimension_numbers<[1], [0], [0], [1], [0, 0, 1, 1], [], []>} : vector<2x32xbf16>, vector<32x32xbf16>, vector<2x32xf32> -> vector<2x32xf32>
    %c0_19 = arith.constant 0 : index
    %c0_20 = arith.constant 0 : index
    %32 = vector.load %arg8[%c0_19, %c0_20] : memref<1x32xf32, #tpu.memory_space<vmem>>, vector<1x32xf32>
    %33 = vector.broadcast %32 : vector<1x32xf32> to vector<2x32xf32>
    %34 = arith.addf %31, %33 : vector<2x32xf32>
    %35 = arith.addf %20, %34 : vector<2x32xf32>
    %cst_21 = arith.constant 0.000000e+00 : f32
    %36 = vector.broadcast %cst_21 : f32 to vector<2x32xf32>
    %37 = arith.maximumf %35, %36 : vector<2x32xf32>
    %38 = arith.truncf %37 : vector<2x32xf32> to vector<2x32xbf16>
    %c0_22 = arith.constant 0 : index
    %c0_23 = arith.constant 0 : index
    %39 = vector.load %arg9[%c0_22, %c0_23] : memref<32x32xbf16, #tpu.memory_space<vmem>>, vector<32x32xbf16>
    %cst_24 = arith.constant dense<0.000000e+00> : vector<2x32xf32>
    %40 = tpu.matmul %38, %39, %cst_24 {dimension_numbers = #tpu.dot_dimension_numbers<[1], [0], [0], [1], [0, 0, 1, 1], [], []>} : vector<2x32xbf16>, vector<32x32xbf16>, vector<2x32xf32> -> vector<2x32xf32>
    %c0_25 = arith.constant 0 : index
    %c0_26 = arith.constant 0 : index
    %41 = vector.load %arg10[%c0_25, %c0_26] : memref<1x32xf32, #tpu.memory_space<vmem>>, vector<1x32xf32>
    %42 = vector.broadcast %41 : vector<1x32xf32> to vector<2x32xf32>
    %43 = arith.addf %40, %42 : vector<2x32xf32>
    %cst_27 = arith.constant 0.000000e+00 : f32
    %44 = vector.broadcast %cst_27 : f32 to vector<2x32xf32>
    %45 = arith.maximumf %43, %44 : vector<2x32xf32>
    %46 = arith.truncf %45 : vector<2x32xf32> to vector<2x32xbf16>
    %c0_28 = arith.constant 0 : index
    %c0_29 = arith.constant 0 : index
    %47 = vector.load %arg11[%c0_28, %c0_29] : memref<32x32xbf16, #tpu.memory_space<vmem>>, vector<32x32xbf16>
    %cst_30 = arith.constant dense<0.000000e+00> : vector<2x32xf32>
    %48 = tpu.matmul %46, %47, %cst_30 {dimension_numbers = #tpu.dot_dimension_numbers<[1], [0], [0], [1], [0, 0, 1, 1], [], []>} : vector<2x32xbf16>, vector<32x32xbf16>, vector<2x32xf32> -> vector<2x32xf32>
    %c0_31 = arith.constant 0 : index
    %c0_32 = arith.constant 0 : index
    %49 = vector.load %arg12[%c0_31, %c0_32] : memref<1x32xf32, #tpu.memory_space<vmem>>, vector<1x32xf32>
    %50 = vector.broadcast %49 : vector<1x32xf32> to vector<2x32xf32>
    %51 = arith.addf %48, %50 : vector<2x32xf32>
    %52 = arith.addf %37, %51 : vector<2x32xf32>
    %cst_33 = arith.constant 0.000000e+00 : f32
    %53 = vector.broadcast %cst_33 : f32 to vector<2x32xf32>
    %54 = arith.maximumf %52, %53 : vector<2x32xf32>
    %55 = arith.truncf %54 : vector<2x32xf32> to vector<2x32xbf16>
    %c0_34 = arith.constant 0 : index
    %c0_35 = arith.constant 0 : index
    %56 = vector.load %arg13[%c0_34, %c0_35] : memref<32x32xbf16, #tpu.memory_space<vmem>>, vector<32x32xbf16>
    %cst_36 = arith.constant dense<0.000000e+00> : vector<2x32xf32>
    %57 = tpu.matmul %55, %56, %cst_36 {dimension_numbers = #tpu.dot_dimension_numbers<[1], [0], [0], [1], [0, 0, 1, 1], [], []>} : vector<2x32xbf16>, vector<32x32xbf16>, vector<2x32xf32> -> vector<2x32xf32>
    %c0_37 = arith.constant 0 : index
    %c0_38 = arith.constant 0 : index
    %58 = vector.load %arg14[%c0_37, %c0_38] : memref<1x32xf32, #tpu.memory_space<vmem>>, vector<1x32xf32>
    %59 = vector.broadcast %58 : vector<1x32xf32> to vector<2x32xf32>
    %60 = arith.addf %57, %59 : vector<2x32xf32>
    %c0_39 = arith.constant 0 : index
    %c0_40 = arith.constant 0 : index
    %61 = vector.load %arg15[%c0_39, %c0_40] : memref<2x32xf32, #tpu.memory_space<vmem>>, vector<2x32xf32>
    tpu.vector_store %arg15[%c0_39, %c0_40], %60 {strides = array<i32>} : memref<2x32xf32, #tpu.memory_space<vmem>>, vector<2x32xf32>,
    return
  }
  func.func @transform_0(%arg0: i32) -> (i32, i32, i32) {
    %c0_i32 = arith.constant 0 : i32
    %c0_i32_0 = arith.constant 0 : i32
    %c0_i32_1 = arith.constant 0 : i32
    return %arg0, %c0_i32, %c0_i32_0 : i32, i32, i32
  }
  func.func @transform_1(%arg0: i32) -> (i32, i32) {
    %c0_i32 = arith.constant 0 : i32
    %c0_i32_0 = arith.constant 0 : i32
    return %arg0, %c0_i32 : i32, i32
  }
  func.func @transform_2(%arg0: i32) -> (i32, i32) {
    %c0_i32 = arith.constant 0 : i32
    %c0_i32_0 = arith.constant 0 : i32
    %c0_i32_1 = arith.constant 0 : i32
    return %c0_i32, %c0_i32_0 : i32, i32
  }
  func.func @transform_3(%arg0: i32) -> (i32, i32) {
    %c0_i32 = arith.constant 0 : i32
    %c0_i32_0 = arith.constant 0 : i32
    %c0_i32_1 = arith.constant 0 : i32
    return %c0_i32, %c0_i32_0 : i32, i32
  }
  func.func @transform_4(%arg0: i32) -> (i32, i32) {
    %c0_i32 = arith.constant 0 : i32
    %c0_i32_0 = arith.constant 0 : i32
    %c0_i32_1 = arith.constant 0 : i32
    return %c0_i32, %c0_i32_0 : i32, i32
  }
  func.func @transform_5(%arg0: i32) -> (i32, i32) {
    %c0_i32 = arith.constant 0 : i32
    %c0_i32_0 = arith.constant 0 : i32
    %c0_i32_1 = arith.constant 0 : i32
    return %c0_i32, %c0_i32_0 : i32, i32
  }
  func.func @transform_6(%arg0: i32) -> (i32, i32) {
    %c0_i32 = arith.constant 0 : i32
    %c0_i32_0 = arith.constant 0 : i32
    %c0_i32_1 = arith.constant 0 : i32
    return %c0_i32, %c0_i32_0 : i32, i32
  }
  func.func @transform_7(%arg0: i32) -> (i32, i32) {
    %c0_i32 = arith.constant 0 : i32
    %c0_i32_0 = arith.constant 0 : i32
    %c0_i32_1 = arith.constant 0 : i32
    return %c0_i32, %c0_i32_0 : i32, i32
  }
  func.func @transform_8(%arg0: i32) -> (i32, i32) {
    %c0_i32 = arith.constant 0 : i32
    %c0_i32_0 = arith.constant 0 : i32
    %c0_i32_1 = arith.constant 0 : i32
    return %c0_i32, %c0_i32_0 : i32, i32
  }
  func.func @transform_9(%arg0: i32) -> (i32, i32) {
    %c0_i32 = arith.constant 0 : i32
    %c0_i32_0 = arith.constant 0 : i32
    %c0_i32_1 = arith.constant 0 : i32
    return %c0_i32, %c0_i32_0 : i32, i32
  }
  func.func @transform_10(%arg0: i32) -> (i32, i32) {
    %c0_i32 = arith.constant 0 : i32
    %c0_i32_0 = arith.constant 0 : i32
    %c0_i32_1 = arith.constant 0 : i32
    return %c0_i32, %c0_i32_0 : i32, i32
  }
  func.func @transform_11(%arg0: i32) -> (i32, i32) {
    %c0_i32 = arith.constant 0 : i32
    %c0_i32_0 = arith.constant 0 : i32
    %c0_i32_1 = arith.constant 0 : i32
    return %c0_i32, %c0_i32_0 : i32, i32
  }
  func.func @transform_12(%arg0: i32) -> (i32, i32) {
    %c0_i32 = arith.constant 0 : i32
    %c0_i32_0 = arith.constant 0 : i32
    %c0_i32_1 = arith.constant 0 : i32
    return %c0_i32, %c0_i32_0 : i32, i32
  }
  func.func @transform_13(%arg0: i32) -> (i32, i32) {
    %c0_i32 = arith.constant 0 : i32
    %c0_i32_0 = arith.constant 0 : i32
    %c0_i32_1 = arith.constant 0 : i32
    return %c0_i32, %c0_i32_0 : i32, i32
  }
  func.func @transform_14(%arg0: i32) -> (i32, i32) {
    %c0_i32 = arith.constant 0 : i32
    %c0_i32_0 = arith.constant 0 : i32
    return %arg0, %c0_i32 : i32, i32
  }
}

</mosaic_0001>

<bundles_post_ra>
// kernel: tpu_custom_call.1
= control target key start
LH: loop header
LB: loop body
LE: loop exit
PB: predicated region body
PF: predicated region fallthrough
CT: control target
= control target key end

     0   :  { %19 = vsyncpa [#allocation3], 0  ;;  %s1143_s0 = inlined_call_operand.hbm [shape: bf16[2,8,32], index: 0, kind: input, shape index: {}]   ;;  %s1144_s1 = inlined_call_operand.vmem [shape: f32[2,2], index: 1, kind: input, shape index: {}]   ;;  %s1145_s2 = inlined_call_operand.vmem [shape: bf16[64,32], index: 2, kind: input, shape index: {}]   ;;  %s1146_s3 = inlined_call_operand.hbm [shape: f32[1,32], index: 3, kind: input, shape index: {}]   ;;  %s1147_s4 = inlined_call_operand.vmem [shape: bf16[32,32], index: 4, kind: input, shape index: {}]   ;;  %s1148_s5 = inlined_call_operand.hbm [shape: f32[1,32], index: 5, kind: input, shape index: {}]   ;;  %s1149_s6 = inlined_call_operand.vmem [shape: bf16[32,32], index: 6, kind: input, shape index: {}]   ;;  %s1150_s7 = inlined_call_operand.hbm [shape: f32[1,32], index: 7, kind: input, shape index: {}]   ;;  %s1151_s8 = inlined_call_operand.vmem [shape: bf16[32,32], index: 8, kind: input, shape index: {}]   ;;  %s1152_s9 = inlined_call_operand.hbm [shape: f32[1,32], index: 9, kind: input, shape index: {}]   ;;  %s1153_s10 = inlined_call_operand.vmem [shape: bf16[32,32], index: 10, kind: input, shape index: {}]   ;;  %s1154_s11 = inlined_call_operand.vmem [shape: f32[1,32], index: 11, kind: input, shape index: {}]   ;;  %s1155_s12 = inlined_call_operand.vmem [shape: bf16[32,32], index: 12, kind: input, shape index: {}]   ;;  %s1156_s13 = inlined_call_operand.vmem [shape: f32[1,32], index: 13, kind: input, shape index: {}]   ;;  %s1157_s14 = inlined_call_operand.hbm [shape: f32[2,32], index: 14, kind: output, shape index: {}]  }
   0x1   :  { %20 = vsyncpa [#allocation6], 0 }
   0x2   :  { %21 = vsyncpa [#allocation9], 0 }
   0x3   :  { %22 = vsyncpa [#allocation4], 0  ;;  %s897_s29 = smov [#allocation5]   ;;  %s898_s15 = smov [#allocation8]  }
   0x4   :  { %s45_s30 = sshll.u32 %s897_s29, 4  ;;  %s69_s16 = sshll.u32 %s898_s15, 4  ;;  %s46_s30 = int_to_ptr.vmem [resolvable:$true] %s45_s30  ;;  %s70_s16 = int_to_ptr.vmem [resolvable:$true] %s69_s16 }
   0x5   :  { %s757_s19 = scalar_lea.hbm %s1146_s3, 16 }
   0x6   :  { %p758_p0 = scmp.ne.s32.totalorder %s1146_s3, %s757_s19  ;;  %p761_p1 = scmp.lt.u32.totalorder %s757_s19, %s1146_s3 }
   0x8   :  { %p763_p2 = pnand %p761_p1, %p758_p0 }
   0xa   :  { %766 = shalt.err (!%p763_p2)
}
   0xb   :  { %s767_s24 = scalar_lea.vmem %s46_s30, 16  ;;  %s771_s25 = scalar_lea.vmem %s46_s30, 32 }
   0xc   :  { %p768_p3 = scmp.ne.s32.totalorder %s46_s30, %s767_s24  ;;  %p772_p4 = scmp.lt.s32.totalorder %s46_s30, %s46_s30 }
   0xd   :  { %p773_p5 = scmp.lt.s32.totalorder %s771_s25, %s767_s24 }
   0xf   :  { %p774_p6 = por %p773_p5, %p772_p4 }
  0x11   :  { %p775_p7 = pnand %p774_p6, %p768_p3 }
  0x13   :  { %778 = shalt.err (!%p775_p7)
}
  0x14   :  { %48 = dma.hbm_to_vmem [thread:$0]  %s1146_s3, 16, %s46_s30, [#allocation6]  }
  0x15   :  { %s779_s15 = scalar_lea.hbm %s1150_s7, 16 }
  0x16   :  { %p780_p8 = scmp.ne.s32.totalorder %s1150_s7, %s779_s15  ;;  %p783_p9 = scmp.lt.u32.totalorder %s779_s15, %s1150_s7 }
  0x18   :  { %p785_p10 = pnand %p783_p9, %p780_p8 }
  0x1a   :  { %788 = shalt.err (!%p785_p10)
}
  0x1b   :  { %s789_s21 = scalar_lea.vmem %s70_s16, 16  ;;  %s793_s22 = scalar_lea.vmem %s70_s16, 32 }
  0x1c   :  { %p790_p11 = scmp.ne.s32.totalorder %s70_s16, %s789_s21  ;;  %p794_p12 = scmp.lt.s32.totalorder %s70_s16, %s70_s16 }
  0x1d   :  { %p795_p13 = scmp.lt.s32.totalorder %s793_s22, %s789_s21 }
  0x1f   :  { %p796_p0 = por %p795_p13, %p794_p12 }
  0x21   :  { %p797_p1 = pnand %p796_p0, %p790_p11 }
  0x23   :  { %800 = shalt.err (!%p797_p1)
}
  0x24   :  { %72 = dma.hbm_to_vmem [thread:$0]  %s1150_s7, 16, %s70_s16, [#allocation9]  }
  0x25   :  { %s899_s23 = smov [#allocation2]   ;;  %s801_s27 = scalar_lea.hbm %s1143_s0, 128 }
  0x26   :  { %s28_s24 = sshll.u32 %s899_s23, 4  ;;  %p802_p2 = scmp.ne.s32.totalorder %s1143_s0, %s801_s27  ;;  %s29_s24 = int_to_ptr.vmem [resolvable:$true] %s28_s24 }
  0x27   :  { %p805_p3 = scmp.lt.u32.totalorder %s801_s27, %s1143_s0 }
  0x29   :  { %p807_p4 = pnand %p805_p3, %p802_p2 }
  0x2b   :  { %810 = shalt.err (!%p807_p4)
}
  0x2c   :  { %s811_s18 = scalar_lea.vmem %s29_s24, 128  ;;  %p816_p6 = scmp.lt.s32.totalorder %s29_s24, %s29_s24 }
  0x2d   :  { %p812_p5 = scmp.ne.s32.totalorder %s29_s24, %s811_s18  ;;  %p817_p7 = scmp.lt.s32.totalorder %s811_s18, %s811_s18 }
  0x2f   :  { %p818_p8 = por %p817_p7, %p816_p6 }
  0x31   :  { %p819_p9 = pnand %p818_p8, %p812_p5 }
  0x33   :  { %822 = shalt.err (!%p819_p9)
}
  0x34   :  { %s900_s7 = smov 64   ;;  %s901_s16 = smov 4  }
  0x35   :  { %34 = dma.hbm_to_vmem [thread:$0]  %s1143_s0, 128, %s29_s24, [#allocation3], %s900_s7, %s900_s7, %s901_s16  }
  0x36   :  { %s902_s21 = smov [#allocation7]   ;;  %s903_s3 = smov [#allocation10]  }
  0x37   :  { %s57_s22 = sshll.u32 %s902_s21, 4  ;;  %s81_s30 = sshll.u32 %s903_s3, 4  ;;  %s58_s22 = int_to_ptr.vmem [resolvable:$true] %s57_s22  ;;  %s82_s30 = int_to_ptr.vmem [resolvable:$true] %s81_s30 }
  0x38   :  { %s823_s26 = scalar_lea.hbm %s1148_s5, 16 }
  0x39   :  { %p824_p10 = scmp.ne.s32.totalorder %s1148_s5, %s823_s26  ;;  %p827_p11 = scmp.lt.u32.totalorder %s823_s26, %s1148_s5 }
  0x3b   :  { %p829_p12 = pnand %p827_p11, %p824_p10 }
  0x3d   :  { %832 = shalt.err (!%p829_p12)
}
  0x3e   :  { %s833_s0 = scalar_lea.vmem %s58_s22, 16  ;;  %s837_s24 = scalar_lea.vmem %s58_s22, 32 }
  0x3f   :  { %p834_p13 = scmp.ne.s32.totalorder %s58_s22, %s833_s0  ;;  %p838_p0 = scmp.lt.s32.totalorder %s58_s22, %s58_s22 }
  0x40   :  { %p839_p1 = scmp.lt.s32.totalorder %s837_s24, %s833_s0 }
  0x42   :  { %p840_p2 = por %p839_p1, %p838_p0 }
  0x44   :  { %p841_p3 = pnand %p840_p2, %p834_p13 }
  0x46   :  { %844 = shalt.err (!%p841_p3)
}
  0x47   :  { %60 = dma.hbm_to_vmem [thread:$0]  %s1148_s5, 16, %s58_s22, [#allocation6]  }
  0x48   :  { %s845_s19 = scalar_lea.hbm %s1152_s9, 16 }
  0x49   :  { %p846_p4 = scmp.ne.s32.totalorder %s1152_s9, %s845_s19  ;;  %p849_p5 = scmp.lt.u32.totalorder %s845_s19, %s1152_s9 }
  0x4b   :  { %p851_p6 = pnand %p849_p5, %p846_p4 }
  0x4d   :  { %854 = shalt.err (!%p851_p6)
}
  0x4e   :  { %s855_s25 = scalar_lea.vmem %s82_s30, 16  ;;  %s859_s26 = scalar_lea.vmem %s82_s30, 32 }
  0x4f   :  { %p856_p7 = scmp.ne.s32.totalorder %s82_s30, %s855_s25  ;;  %p860_p8 = scmp.lt.s32.totalorder %s82_s30, %s82_s30 }
  0x50   :  { %p861_p9 = scmp.lt.s32.totalorder %s859_s26, %s855_s25 }
  0x52   :  { %p862_p10 = por %p861_p9, %p860_p8 }
  0x54   :  { %p863_p11 = pnand %p862_p10, %p856_p7 }
  0x56   :  { %866 = shalt.err (!%p863_p11)
}
  0x57   :  { %84 = dma.hbm_to_vmem [thread:$0]  %s1152_s9, 16, %s82_s30, [#allocation9]  }
  0x58   :  { %889 = dma.done.wait [#allocation3], 128  }
  0x59   :  { %890 = vsyncadd [#allocation3], 4294967168 }
  0x5a   :  { %891 = dma.done.wait [#allocation6], 32  }
  0x5b   :  { %892 = vsyncadd [#allocation6], 4294967264 }
  0x5c   :  { %893 = dma.done.wait [#allocation9], 32  }
  0x5d   :  { %894 = vsyncadd [#allocation9], 4294967264  ;;  %v904_v0 = vmov 1   ;;  %v111_v1 = vld [vmem:[%s1144_s1] sm:$0x3]  ;;  %v905_v2 = vmov 0  }
  0x5e   :  { %740 = vset.pattern.permute.xlu0 %v904_v0  ;;  %v743_v3 = vld [vmem:[%s1145_s2] sm:$0xff]   ;;  %v906_v4 = vmov 0.0   ;;  %v744_v5 = vld [vmem:[%s1145_s2 + $0x8] sm:$0xff]   ;;  %v745_v6 = vld [vmem:[%s1145_s2 + $0x10] sm:$0xff]   ;;  %vm135_vm0 = vcmask 259072   ;;  %vm114_vm1 = vcmask 254976  }
  0x5f   :  { %160 = vperm.xlu0 %740, %v111_v1   ;;  %675 = vmatprep.subr.bf16.mxu0 %v906_v4  ;;  %v652_v7 = vld [vmem:[#allocation2] sm:$0xff]   ;;  %v746_v30 = vld [vmem:[%s1145_s2 + $0x18] sm:$0xff]   ;;  %vm907_vm2 = vmmov 0   ;;  %vm170_vm3 = vcmask 1041409   ;;  %s908_s2 = smov 32   ;;  %vm180_vm4 = vcmask 261120  }
  0x60   :  { %687 = vmatprep.subr.bf16.mxu1 %v906_v4  ;;  %676 = vmatpush3.bf16.msra.mxu0 %v743_v3  ;;  %v654_v8 = vunpack.c.h.bf16 %v652_v7  ;;  %v653_v9 = vunpack.c.l.bf16 %v652_v7  ;;  %v747_v35 = vld [vmem:[%s1147_s4] sm:$0xff]   ;;  %vm222_vm5 = vcmask 523264   ;;  %v748_v57 = vld [vmem:[%s1147_s4 + $0x8] sm:$0xff]  }
  0x61   :  { %677 = vmatprep.subr.bf16.mxu0 %v906_v4  ;;  %683 = vmatprep.mubr.msk.bf16.mxu0 %vm907_vm2, %v906_v4  ;;  %v625_v58 = vld [vmem:[#allocation5] ss:$0 sm:$0xff]  ;;  %v749_v63 = vld [vmem:[%s1149_s6] sm:$0xff]   ;;  %v631_v3 = vld [vmem:[#allocation7] ss:$0 sm:$0xff] }
  0x62   :  { %v132_v10 = vrot.slane %v654_v8, 2  ;;  %v131_v11 = vrot.slane %v653_v9, 2  ;;  %v115_v16 = vsel %vm114_vm1, %v653_v9, 0.0  ;;  %v122_v17 = vsel %vm114_vm1, %v654_v8, 0.0  ;;  %691 = vmatprep.mubr.msk.bf16.mxu1 %vm907_vm2, %v906_v4  ;;  %688 = vmatpush3.bf16.msra.mxu1 %v747_v35  ;;  %v643_v35 = vld [vmem:[%s1154_s11] ss:$0 sm:$0xff] }
  0x63   :  { %741 = vset.pattern.permute.xlu0 %v905_v2  ;;  %v116_v19 = vrot.slane %v115_v16, 4  ;;  %v123_v20 = vrot.slane %v122_v17, 4  ;;  %689 = vmatprep.subr.bf16.mxu1 %v906_v4  ;;  %v750_v2 = vld [vmem:[%s1149_s6 + $0x8] sm:$0xff]  }
  0x64   :  { %152 = vperm.xlu0 %741, %v111_v1   ;;  %678 = vmatpush3.bf16.msra.mxu0 %v744_v5  ;;  %v143_v12 = vsel %vm135_vm0, %v132_v10, 0.0  ;;  %v136_v13 = vsel %vm135_vm0, %v131_v11, 0.0 }
  0x65   :  { %679 = vmatprep.subr.bf16.mxu0 %v906_v4  ;;  %v144_v14 = vrot.slane %v143_v12, 4  ;;  %v137_v15 = vrot.slane %v136_v13, 4  ;;  %v117_v23 = vadd.f32 %v116_v19, %v115_v16  ;;  %v124_v24 = vadd.f32 %v123_v20, %v122_v17 }
  0x66   :  { %690 = vmatpush3.bf16.msra.mxu1 %v748_v57 }
  0x67   :  { %v145_v18 = vadd.f32 %v144_v14, %v143_v12  ;;  %v138_v21 = vadd.f32 %v137_v15, %v136_v13  ;;  %v118_v27 = vrot.slane %v117_v23, 2  ;;  %v125_v28 = vrot.slane %v124_v24, 2  ;;  %695 = vmatprep.subr.bf16.mxu1 %v906_v4  ;;  %v751_v12 = vld [vmem:[%s1151_s8] sm:$0xff]   ;;  %v752_v13 = vld [vmem:[%s1151_s8 + $0x8] sm:$0xff]  }
  0x68   :  { %742 = vset.pattern.permute.xlu0 %v904_v0  ;;  %680 = vmatpush3.bf16.msra.mxu0 %v745_v6  ;;  %v753_v14 = vld [vmem:[%s1153_s10] sm:$0xff]   ;;  %v635_v15 = vld [vmem:[#allocation8] ss:$0 sm:$0xff] }
  0x69   :  { %681 = vmatprep.subr.bf16.mxu0 %v906_v4  ;;  %v146_v22 = vrot.slane %v145_v18, 2  ;;  %v139_v25 = vrot.slane %v138_v21, 2  ;;  %v119_v32 = vadd.f32 %v118_v27, %v117_v23  ;;  %v126_v33 = vadd.f32 %v125_v28, %v124_v24  ;;  %v754_v24 = vld [vmem:[%s1153_s10 + $0x8] sm:$0xff]  }
  0x6b   :  { %v147_v26 = vadd.f32 %v146_v22, %v145_v18  ;;  %v140_v29 = vadd.f32 %v139_v25, %v138_v21  ;;  %v120_v38 = vrot.slane %v119_v32, 1  ;;  %v127_v39 = vrot.slane %v126_v33, 1  ;;  %v639_v25 = vld [vmem:[#allocation10] ss:$0 sm:$0xff] }
  0x6c   :  { %682 = vmatpush3.bf16.msra.mxu0 %v746_v30 }
  0x6d   :  { %v148_v31 = vrot.slane %v147_v26, 1  ;;  %703 = vmatprep.subr.bf16.mxu0 %v906_v4  ;;  %v141_v34 = vrot.slane %v140_v29, 1  ;;  %v121_v43 = vadd.f32 %v120_v38, %v119_v32  ;;  %v128_v44 = vadd.f32 %v127_v39, %v126_v33  ;;  %v755_v33 = vld [vmem:[%s1155_s12] sm:$0xff]  }
  0x6f   :  { %v149_v36 = vadd.f32 %v148_v31, %v147_v26  ;;  %v142_v40 = vadd.f32 %v141_v34, %v140_v29  ;;  %v756_v34 = vld [vmem:[%s1155_s12 + $0x8] sm:$0xff]   ;;  %s909_s12 = smov [#allocation11]  }
  0x70   :  { %s614_s24 = sshll.u32 %s909_s12, 4  ;;  %s615_s24 = int_to_ptr.vmem [resolvable:$true] %s614_s24 }
  0x71   :  { %s867_s11 = scalar_lea.vmem %s615_s24, 32  ;;  %p872_p13 = scmp.lt.s32.totalorder %s615_s24, %s615_s24 }
  0x72   :  { %p868_p12 = scmp.ne.s32.totalorder %s615_s24, %s867_s11  ;;  %p873_p0 = scmp.lt.s32.totalorder %s867_s11, %s867_s11 }
  0x74   :  { %p874_p1 = por %p873_p0, %p872_p13 }
  0x76   :  { %p875_p2 = pnand %p874_p1, %p868_p12 }
  0xde   :  { %v161_v37 = vpop.permute.xlu0 %160 }
  0xdf   :  { %v162_v41 = vrot.slane %v161_v37, 1  ;;  %v165_v45 = vmul.f32 %v161_v37, %v142_v40 }
  0xe1   :  { %v166_v42 = vmul.f32 %v162_v41, %v149_v36 }
  0xe3   :  { %v175_v46 = vrot.slane %v166_v42, 7  ;;  %v153_v47 = vpop.permute.xlu0 %152 }
  0xe4   :  { %v154_v48 = vrot.slane %v153_v47, 1  ;;  %v157_v50 = vmul.f32 %v153_v47, %v121_v43 }
  0xe5   :  { %v176_v49 = vsel %vm170_vm3, %v175_v46, %v165_v45 }
  0xe6   :  { %177 = vrot.lane.b32.xlu1 %v176_v49, %s908_s2  ;;  %v158_v51 = vmul.f32 %v154_v48, %v128_v44 }
  0xe8   :  { %v169_v52 = vrot.slane %v158_v51, 7 }
  0xea   :  { %v171_v53 = vsel %vm170_vm3, %v169_v52, %v157_v50 }
 0x158   :  { %v178_v54 = vpop.permute.xlu1 %177 }
 0x159   :  { %v181_v55 = vsel %vm180_vm4, %v171_v53, %v178_v54 }
 0x15a   :  { %v182_v56 = vpack.c.bf16 %v181_v55, %v181_v55 }
 0x15c   :  { %684 = vmatmul.mubr.msk.bf16.vlgmr.msra.gmra.mrb[0].mxu0 %vm222_vm5, %v182_v56 }
 0x15d   :  { %707 = vmatprep.mubr.msk.bf16.mxu0 %vm907_vm2, %v906_v4  ;;  %704 = vmatpush3.bf16.msra.mxu0 %v751_v12 }
 0x15e   :  { %705 = vmatprep.subr.bf16.mxu0 %v906_v4 }
 0x161   :  { %706 = vmatpush3.bf16.msra.mxu0 %v752_v13 }
 0x162   :  { %719 = vmatprep.subr.bf16.mxu0 %v906_v4 }
 0x22f   :  { %v260_v59 = vpop.f32.mrb[0].mxu0 }
 0x230   :  { %v261_v60 = vadd.f32 %v625_v58, %v260_v59  ;;  %v685_v61 = vpop.f32.mrb[1].mxu0 }
 0x231   :  { %v263_v62 = vpop.f32.mrb[2].mxu0 }
 0x232   :  { %v266_v0 = vpack.c.bf16 %v261_v60, %v261_v60  ;;  %v686_v1 = vpop.f32.mrb[3].mxu0 }
 0x234   :  { %692 = vmatmul.mubr.msk.bf16.vlgmr.msra.gmra.mrb[0].mxu1 %vm180_vm4, %v266_v0 }
 0x235   :  { %696 = vmatpush3.bf16.msra.mxu1 %v749_v63  ;;  %699 = vmatprep.mubr.msk.bf16.mxu1 %vm907_vm2, %v906_v4 }
 0x236   :  { %697 = vmatprep.subr.bf16.mxu1 %v906_v4 }
 0x239   :  { %698 = vmatpush3.bf16.msra.mxu1 %v750_v2 }
 0x23a   :  { %711 = vmatprep.subr.bf16.mxu1 %v906_v4 }
 0x307   :  { %v327_v5 = vpop.f32.mrb[0].mxu1 }
 0x308   :  { %v328_v6 = vadd.f32 %v631_v3, %v327_v5  ;;  %v693_v7 = vpop.f32.mrb[1].mxu1 }
 0x309   :  { %v330_v8 = vpop.f32.mrb[2].mxu1 }
 0x30a   :  { %v333_v9 = vmax.f32 %v328_v6, 0.0  ;;  %v694_v10 = vpop.f32.mrb[3].mxu1 }
 0x30c   :  { %v334_v11 = vpack.c.bf16 %v333_v9, %v333_v9 }
 0x30e   :  { %700 = vmatmul.mubr.msk.bf16.vlgmr.msra.gmra.mrb[4].mxu1 %vm180_vm4, %v334_v11 }
 0x30f   :  { %715 = vmatprep.mubr.msk.bf16.mxu1 %vm907_vm2, %v906_v4  ;;  %712 = vmatpush3.bf16.msra.mxu1 %v753_v14 }
 0x310   :  { %713 = vmatprep.subr.bf16.mxu1 %v906_v4 }
 0x313   :  { %714 = vmatpush3.bf16.msra.mxu1 %v754_v24 }
 0x3e1   :  { %v395_v16 = vpop.f32.mrb[4].mxu1 }
 0x3e2   :  { %v396_v17 = vadd.f32 %v635_v15, %v395_v16  ;;  %v701_v18 = vpop.f32.mrb[5].mxu1 }
 0x3e3   :  { %v398_v19 = vpop.f32.mrb[6].mxu1 }
 0x3e4   :  { %v401_v20 = vadd.f32 %v396_v17, %v261_v60  ;;  %v702_v21 = vpop.f32.mrb[7].mxu1 }
 0x3e6   :  { %v402_v22 = vmax.f32 %v401_v20, 0.0 }
 0x3e8   :  { %v403_v23 = vpack.c.bf16 %v402_v22, %v402_v22 }
 0x3ea   :  { %708 = vmatmul.mubr.msk.bf16.vlgmr.msra.gmra.mrb[4].mxu0 %vm180_vm4, %v403_v23 }
 0x3eb   :  { %723 = vmatprep.mubr.msk.bf16.mxu0 %vm907_vm2, %v906_v4  ;;  %720 = vmatpush3.bf16.msra.mxu0 %v755_v33 }
 0x3ec   :  { %721 = vmatprep.subr.bf16.mxu0 %v906_v4  ;;  %v647_v4 = vld [vmem:[%s1156_s13] ss:$0 sm:$0xff] }
 0x3ef   :  { %722 = vmatpush3.bf16.msra.mxu0 %v756_v34 }
 0x4bd   :  { %v464_v26 = vpop.f32.mrb[4].mxu0 }
 0x4be   :  { %v465_v27 = vadd.f32 %v639_v25, %v464_v26  ;;  %v709_v28 = vpop.f32.mrb[5].mxu0 }
 0x4bf   :  { %v467_v29 = vpop.f32.mrb[6].mxu0 }
 0x4c0   :  { %v470_v30 = vmax.f32 %v465_v27, 0.0  ;;  %v710_v31 = vpop.f32.mrb[7].mxu0 }
 0x4c2   :  { %v471_v32 = vpack.c.bf16 %v470_v30, %v470_v30 }
 0x4c4   :  { %716 = vmatmul.mubr.msk.bf16.vlgmr.msra.gmra.mrb[8].mxu1 %vm180_vm4, %v471_v32 }
 0x597   :  { %v532_v36 = vpop.f32.mrb[8].mxu1 }
 0x598   :  { %v533_v37 = vadd.f32 %v643_v35, %v532_v36  ;;  %v717_v38 = vpop.f32.mrb[9].mxu1 }
 0x599   :  { %v535_v39 = vpop.f32.mrb[10].mxu1 }
 0x59a   :  { %v538_v40 = vadd.f32 %v533_v37, %v402_v22  ;;  %v718_v41 = vpop.f32.mrb[11].mxu1 }
 0x59c   :  { %v539_v42 = vmax.f32 %v538_v40, 0.0 }
 0x59e   :  { %v540_v43 = vpack.c.bf16 %v539_v42, %v539_v42 }
 0x5a0   :  { %724 = vmatmul.mubr.msk.bf16.vlgmr.msra.gmra.mrb[8].mxu0 %vm180_vm4, %v540_v43 }
 0x673   :  { %v601_v44 = vpop.f32.mrb[8].mxu0 }
 0x674   :  { %v602_v45 = vadd.f32 %v647_v4, %v601_v44  ;;  %v725_v46 = vpop.f32.mrb[9].mxu0 }
 0x675   :  { %v604_v47 = vpop.f32.mrb[10].mxu0 }
 0x676   :  { %607 = vst.msk [vmem:[#allocation11] sm:$0x3] %vm114_vm1, %v602_v45  ;;  %v726_v48 = vpop.f32.mrb[11].mxu0 }
 0x677   :  { %878 = shalt.err (!%p875_p2)
}
 0x678   :  { %s879_s13 = scalar_lea.hbm %s1157_s14, 32 }
 0x679   :  { %p880_p3 = scmp.ne.s32.totalorder %s1157_s14, %s879_s13  ;;  %p883_p4 = scmp.lt.u32.totalorder %s879_s13, %s1157_s14 }
 0x67b   :  { %p885_p5 = pnand %p883_p4, %p880_p3 }
 0x67d   :  { %888 = shalt.err (!%p885_p5)
}
 0x67e   :  { %617 = dma.vmem_to_hbm [thread:$0]  %s615_s24, 32, %s1157_s14, [#allocation4]  }
 0x67f   :  { %895 = dma.done.wait [#allocation4], 32  }
 0x680   :  { %896 = vsyncadd [#allocation4], 4294967264 }
 0x681   :  { %621 = vsyncpa [#allocation3], 1 }
 0x682   :  { %622 = vsyncpa [#allocation6], 1 }
 0x683   :  { %623 = vsyncpa [#allocation9], 1 }
 0x684   :  { %624 = vsyncpa [#allocation4], 1 }

</bundles_post_ra>
